<compile_context>
chip_gen: v7x
topology: tpu7x:2x2x1
jax: 0.10.0
libtpu: 0.0.40
codegen_flags: <defaults>
</compile_context>

<pallas_src>
import jax
import jax.numpy as jnp
from jax.experimental import pallas as pl
from jax.experimental.pallas import tpu as pltpu

LANE = 128   # lane width; all activations / weight blocks are padded to 128 lanes
KPAD = 128   # every weight block stored as (128, 128) (K zero-padded -> full-lane MXU op)
BROWS = 8    # bias blocks padded to 8 sublanes (row 0 holds the bias)
SUBL = 16    # batch-tile sublane granularity (safe for bf16 sublane packing)


def _round_up(n, m):
    return ((n + m - 1) // m) * m


# ---------------------------------------------------------------------------
# Static layer configuration (mirrors the PyTorch __init__ loops exactly)
# ---------------------------------------------------------------------------
def build_configs(x_dim, c_dim, enc_layers, dec_layers):
    assert enc_layers[0] == x_dim
    enc_cfg = []          # encoder_net layers: (din, dout, residual, relu)
    fc_cfg = None         # shared config for fc1 / fc2 heads
    for j, (i, k) in enumerate(zip(enc_layers[:-1], enc_layers[1:])):
        if j == 0:
            enc_cfg.append((i + c_dim, k, (i + c_dim) == k, True))
        elif j == len(enc_layers) - 2:
            fc_cfg = (i, k, i == k, False)          # activation=None
        else:
            enc_cfg.append((i, k, i == k, True))

    dec_cfg = []
    for j, (i, k) in enumerate(zip(dec_layers[:-1], dec_layers[1:])):
        if j == 0:
            dec_cfg.append((i + c_dim, k, (i + c_dim) == k, True))
        elif j == len(dec_layers) - 2:
            dec_cfg.append((i, k, i == k, False))   # activation=None
        else:
            dec_cfg.append((i, k, i == k, True))

    assert fc_cfg is not None
    return enc_cfg, fc_cfg, dec_cfg


# ---------------------------------------------------------------------------
# Parameter init (deterministic, Kaiming-ish scale) — structured, named params
# ---------------------------------------------------------------------------
def init_params(key, enc_cfg, fc_cfg, dec_cfg):
    named = {}

    def linear(k, din, dout):
        k1, k2 = jax.random.split(k)
        scale = 1.0 / jnp.sqrt(jnp.float32(din))
        w = jax.random.normal(k1, (din, dout), jnp.float32) * scale
        b = jax.random.normal(k2, (1, dout), jnp.float32) * 0.01
        return w, b

    keys = iter(jax.random.split(key, len(enc_cfg) + 2 + len(dec_cfg)))
    for li, (din, dout, _r, _a) in enumerate(enc_cfg):
        named[f"enc{li}_w"], named[f"enc{li}_b"] = linear(next(keys), din, dout)
    named["fc1_w"], named["fc1_b"] = linear(next(keys), fc_cfg[0], fc_cfg[1])
    named["fc2_w"], named["fc2_b"] = linear(next(keys), fc_cfg[0], fc_cfg[1])
    for li, (din, dout, _r, _a) in enumerate(dec_cfg):
        named[f"dec{li}_w"], named[f"dec{li}_b"] = linear(next(keys), din, dout)
    return named


# ---------------------------------------------------------------------------
# Pack all in-kernel parameters into one (rows, 128) slab.
# Weights -> (128,128) zero-padded blocks, biases -> (8,128) blocks (row 0 used).
# fc1/fc2 are fused into a single head weight [fc1_w | fc2_w].
# ---------------------------------------------------------------------------
def pack_params(named, enc_cfg, dec_cfg, dtype=jnp.bfloat16):
    entries = []
    for li in range(len(enc_cfg)):
        entries.append((f"enc{li}_w", named[f"enc{li}_w"]))
        entries.append((f"enc{li}_b", named[f"enc{li}_b"]))
    fc_w = jnp.concatenate([named["fc1_w"], named["fc2_w"]], axis=1)
    fc_b = jnp.concatenate([named["fc1_b"], named["fc2_b"]], axis=1)
    entries.append(("fc_w", fc_w))
    entries.append(("fc_b", fc_b))
    for li in range(len(dec_cfg)):
        entries.append((f"dec{li}_w", named[f"dec{li}_w"]))
        entries.append((f"dec{li}_b", named[f"dec{li}_b"]))

    blocks, offsets, off = [], {}, 0
    for name, arr in entries:
        din, dout = arr.shape
        assert din <= KPAD and dout <= LANE, "feature widths must be <= 128"
        rows = BROWS if name.endswith("_b") else KPAD
        blk = jnp.zeros((rows, LANE), dtype).at[:din, :dout].set(arr.astype(dtype))
        blocks.append(blk)
        offsets[name] = off
        off += rows
    return jnp.concatenate(blocks, axis=0), offsets


# ---------------------------------------------------------------------------
# Pallas kernel: full CVAE forward over one batch tile
# ---------------------------------------------------------------------------
def make_cvae_kernel(enc_cfg, fc_cfg, dec_cfg, offsets, dims):
    x_dim, c_dim, latent_dim, recon_dim = dims

    def wblk(p_ref, name):
        return p_ref[pl.ds(offsets[name], KPAD), :]       # full (128,128) block

    def brow(p_ref, name):
        return p_ref[pl.ds(offsets[name], 1), :]          # (1,128) bias row

    def layer(p_ref, h, wname, bname, residual, relu):
        w = wblk(p_ref, wname)
        out = jnp.dot(h.astype(w.dtype), w, preferred_element_type=jnp.float32)
        out = out + brow(p_ref, bname).astype(jnp.float32)
        if residual:
            out = out + h
        if relu:
            out = jnp.maximum(out, 0.0)
        return out

    def kernel(x_ref, c_ref, eps_ref, p_ref, out_ref):
        tb = x_ref.shape[0]

        def lane_pad(parts):  # concat + zero-pad to a lane-dense 128-wide activation
            width = sum(p.shape[-1] for p in parts)
            if width < LANE:
                parts = parts + [jnp.zeros((tb, LANE - width), jnp.float32)]
            return jnp.concatenate(parts, axis=-1)

        x = x_ref[...].astype(jnp.float32)
        c = c_ref[...].astype(jnp.float32)
        eps = eps_ref[...].astype(jnp.float32)

        # ---- encoder: input is [x | c | 0-pad] carried at 128 lanes ----
        h = lane_pad([x, c])
        for li, (_di, _do, res, relu) in enumerate(enc_cfg):
            h = layer(p_ref, h, f"enc{li}_w", f"enc{li}_b", res, relu)

        # ---- fused fc1/fc2 heads: one matmul -> lanes [mu | log_var | 0-pad] ----
        mulv = layer(p_ref, h, "fc_w", "fc_b", residual=False, relu=False)
        mu = mulv[:, :latent_dim]
        lv = mulv[:, latent_dim:2 * latent_dim]
        if fc_cfg[2]:                     # residual heads (din == dout)
            mu = mu + h[:, :latent_dim]
            lv = lv + h[:, :latent_dim]
        if fc_cfg[3]:                     # always False in the module (activation=None)
            mu = jnp.maximum(mu, 0.0)
            lv = jnp.maximum(lv, 0.0)

        # ---- reparameterization: z = eps * exp(0.5 * log_var) + mu ----
        z = eps * jnp.exp(0.5 * lv) + mu

        # ---- decoder: input is [z | c | 0-pad]; dec0 weight holds both halves ----
        d = lane_pad([z, c])
        for li, (_di, _do, res, relu) in enumerate(dec_cfg):
            d = layer(p_ref, d, f"dec{li}_w", f"dec{li}_b", res, relu)

        # ---- single lane-dense output slab: [recon | mu | log_var | 0-pad] ----
        out_ref[...] = lane_pad([d[:, :recon_dim], mu, lv]).astype(out_ref.dtype)

    return kernel


# ---------------------------------------------------------------------------
# Wrapper
# ---------------------------------------------------------------------------
def cvae_forward(x, c, eps, params, enc_cfg, fc_cfg, dec_cfg, *,
                 tile_b_max=1024, compute_dtype=jnp.bfloat16,
                 vmem_limit_bytes=None):
    B, x_dim = x.shape
    c_dim = c.shape[1]
    latent_dim = fc_cfg[1]
    recon_dim = dec_cfg[-1][1]
    assert x_dim + c_dim <= LANE and latent_dim + c_dim <= LANE
    assert recon_dim + 2 * latent_dim <= LANE

    # ---- batch tiling: single big step for small/medium B; >=2 steps (>=512 rows each)
    # once B >= 1024 so both v7x TensorCores get a share of the "parallel" axis. ----
    b_pad8 = _round_up(max(B, SUBL), SUBL)
    tile_cap = _round_up(min(tile_b_max, b_pad8), SUBL)
    grid_b = pl.cdiv(b_pad8, tile_cap)
    if grid_b == 1 and b_pad8 >= 1024:
        grid_b = 2
    tile_b = _round_up(pl.cdiv(b_pad8, grid_b), SUBL)
    b_pad = grid_b * tile_b

    def prep(a):
        a = a.astype(compute_dtype)
        if a.shape[0] != b_pad:
            a = jnp.pad(a, ((0, b_pad - a.shape[0]), (0, 0)))
        return a

    xk, ck, ek = prep(x), prep(c), prep(eps)

    # pack weights into one VMEM-resident slab (bf16 by default)
    slab, offsets = pack_params(params, enc_cfg, dec_cfg, dtype=compute_dtype)

    kernel = make_cvae_kernel(enc_cfg, fc_cfg, dec_cfg, offsets,
                              (x_dim, c_dim, latent_dim, recon_dim))

    n_mm = len(enc_cfg) + 1 + len(dec_cfg)          # fused fc heads = 1 matmul
    isz = jnp.dtype(compute_dtype).itemsize
    cost = pl.CostEstimate(
        flops=int(2 * b_pad * KPAD * LANE * n_mm),
        transcendentals=int(b_pad * latent_dim),
        bytes_accessed=int(b_pad * (x_dim + c_dim + latent_dim) * isz
                           + slab.size * isz
                           + b_pad * LANE * 4))

    out = pl.pallas_call(
        kernel,
        grid=(grid_b,),
        in_specs=[
            pl.BlockSpec((tile_b, x_dim), lambda i: (i, 0)),
            pl.BlockSpec((tile_b, c_dim), lambda i: (i, 0)),
            pl.BlockSpec((tile_b, latent_dim), lambda i: (i, 0)),
            # weights: constant block index -> DMA'd once, stays VMEM-resident
            pl.BlockSpec(slab.shape, lambda i: (0, 0)),
        ],
        out_specs=pl.BlockSpec((tile_b, LANE), lambda i: (i, 0)),
        out_shape=jax.ShapeDtypeStruct((b_pad, LANE), jnp.float32),
        compiler_params=pltpu.CompilerParams(
            dimension_semantics=("parallel",),
            vmem_limit_bytes=vmem_limit_bytes),
        cost_estimate=cost,
    )(xk, ck, ek, slab)

    # single trim (batch pad + lane pad), then split recon / mu / log_var
    used = recon_dim + 2 * latent_dim
    out = out[:B, :used]
    recon = out[:, :recon_dim]
    mu = out[:, recon_dim:recon_dim + latent_dim]
    log_var = out[:, recon_dim + latent_dim:]
    return recon, mu, log_var


# ---------------------------------------------------------------------------
# Pure-JAX reference (for correctness check)
# ---------------------------------------------------------------------------
def cvae_reference(x, c, eps, params, enc_cfg, fc_cfg, dec_cfg):
    h = jnp.concatenate([x, c], axis=-1)
    for li, (_di, _do, res, relu) in enumerate(enc_cfg):
        hn = h @ params[f"enc{li}_w"] + params[f"enc{li}_b"]
        h = hn + h if res else hn
        if relu:
            h = jnp.maximum(h, 0.0)
    mu = h @ params["fc1_w"] + params["fc1_b"] + (h if fc_cfg[2] else 0.0)
    lv = h @ params["fc2_w"] + params["fc2_b"] + (h if fc_cfg[2] else 0.0)
    z = eps * jnp.exp(0.5 * lv) + mu
    d = jnp.concatenate([z, c], axis=-1)
    for li, (_di, _do, res, relu) in enumerate(dec_cfg):
        dn = d @ params[f"dec{li}_w"] + params[f"dec{li}_b"]
        d = dn + d if res else dn
        if relu:
            d = jnp.maximum(d, 0.0)
    return d, mu, lv


if __name__ == "__main__":
    # Small shapes consistent with the module: x (B, x_dim), c (B, c_dim).
    B = 64
    x_dim, c_dim = 32, 8
    enc_layers = [32, 64, 64, 16]   # -> latent dim 16
    dec_layers = [16, 64, 64, 32]   # -> reconstruction dim 32

    enc_cfg, fc_cfg, dec_cfg = build_configs(x_dim, c_dim, enc_layers, dec_layers)

    key = jax.random.PRNGKey(0)
    kx, kc, keps, kparam = jax.random.split(key, 4)
    x = jax.random.normal(kx, (B, x_dim), jnp.float32)
    c = jax.random.normal(kc, (B, c_dim), jnp.float32)
    # TODO(synk): torch.randn_like inside sampling() has no in-kernel equivalent with
    # identical stream semantics; eps is drawn with jax.random and passed in.
    eps = jax.random.normal(keps, (B, enc_layers[-1]), jnp.float32)
    params = init_params(kparam, enc_cfg, fc_cfg, dec_cfg)

    recon_ref, mu_ref, lv_ref = cvae_reference(x, c, eps, params,
                                               enc_cfg, fc_cfg, dec_cfg)

    # Exactness gate: f32-streamed kernel must match the pure-JAX reference tightly.
    r32, m32, l32 = cvae_forward(x, c, eps, params, enc_cfg, fc_cfg, dec_cfg,
                                 compute_dtype=jnp.float32)
    jax.block_until_ready((r32, m32, l32))
    assert r32.shape == (B, dec_layers[-1])
    assert m32.shape == (B, enc_layers[-1]) and l32.shape == (B, enc_layers[-1])
    assert jnp.allclose(r32, recon_ref, atol=1e-4, rtol=1e-4)
    assert jnp.allclose(m32, mu_ref, atol=1e-4, rtol=1e-4)
    assert jnp.allclose(l32, lv_ref, atol=1e-4, rtol=1e-4)

    # Default fast path: bf16-streamed inputs/weights with f32 accumulation
    # (looser tolerance per the bf16 streaming precision trade).
    rbf, mbf, lbf = cvae_forward(x, c, eps, params, enc_cfg, fc_cfg, dec_cfg)
    jax.block_until_ready((rbf, mbf, lbf))
    assert jnp.allclose(rbf, recon_ref, atol=1.5e-1, rtol=1.5e-1)
    assert jnp.allclose(mbf, mu_ref, atol=1.5e-1, rtol=1.5e-1)
    assert jnp.allclose(lbf, lv_ref, atol=1.5e-1, rtol=1.5e-1)

    print("KERNEL_OK")
</pallas_src>

<mosaic_0001>
module attributes {stable_mosaic.version = 11 : i64} {
  func.func @kernel(%arg0: i32, %arg1: memref<64x32xf32, #tpu.memory_space<vmem>>, %arg2: memref<64x8xf32, #tpu.memory_space<vmem>>, %arg3: memref<64x16xf32, #tpu.memory_space<vmem>>, %arg4: memref<816x128xf32, #tpu.memory_space<vmem>>, %arg5: memref<64x128xf32, #tpu.memory_space<vmem>>) attributes {dimension_semantics = [#tpu.dimension_semantics<parallel>], iteration_bounds = array<i64: 1>, scalar_prefetch = 0 : i64, scratch_operands = 0 : i64, tpu.core_type = #tpu.core_type<tc>, window_params = [{transform_indices = @transform_0, window_bounds = array<i64: 64, 32>}, {transform_indices = @transform_1, window_bounds = array<i64: 64, 8>}, {transform_indices = @transform_2, window_bounds = array<i64: 64, 16>}, {pipeline_mode = #tpu.pipeline_mode<synchronous>, transform_indices = @transform_3, window_bounds = array<i64: 816, 128>}, {transform_indices = @transform_4, window_bounds = array<i64: 64, 128>}]} {
    %c0 = arith.constant 0 : index
    %c0_0 = arith.constant 0 : index
    %0 = vector.load %arg1[%c0, %c0_0] : memref<64x32xf32, #tpu.memory_space<vmem>>, vector<64x32xf32>
    %c0_1 = arith.constant 0 : index
    %c0_2 = arith.constant 0 : index
    %1 = vector.load %arg2[%c0_1, %c0_2] : memref<64x8xf32, #tpu.memory_space<vmem>>, vector<64x8xf32>
    %c0_3 = arith.constant 0 : index
    %c0_4 = arith.constant 0 : index
    %2 = vector.load %arg3[%c0_3, %c0_4] : memref<64x16xf32, #tpu.memory_space<vmem>>, vector<64x16xf32>
    %cst = arith.constant 0.000000e+00 : f32
    %3 = vector.broadcast %cst : f32 to vector<64x88xf32>
    %4 = tpu.concatenate %0, %1, %3 in 1 : vector<64x32xf32>, vector<64x8xf32>, vector<64x88xf32> -> vector<64x128xf32>
    %c0_5 = arith.constant 0 : index
    %c0_6 = arith.constant 0 : index
    %5 = vector.load %arg4[%c0_5, %c0_6] : memref<816x128xf32, #tpu.memory_space<vmem>>, vector<128x128xf32>
    %cst_7 = arith.constant dense<0.000000e+00> : vector<64x128xf32>
    %6 = tpu.matmul %4, %5, %cst_7 {dimension_numbers = #tpu.dot_dimension_numbers<[1], [0], [0], [1], [0, 0, 1, 1], [], []>} : vector<64x128xf32>, vector<128x128xf32>, vector<64x128xf32> -> vector<64x128xf32>
    %c128 = arith.constant 128 : index
    %c0_8 = arith.constant 0 : index
    %7 = vector.load %arg4[%c128, %c0_8] : memref<816x128xf32, #tpu.memory_space<vmem>>, vector<1x128xf32>
    %8 = vector.broadcast %7 : vector<1x128xf32> to vector<64x128xf32>
    %9 = arith.addf %6, %8 : vector<64x128xf32>
    %cst_9 = arith.constant 0.000000e+00 : f32
    %10 = vector.broadcast %cst_9 : f32 to vector<64x128xf32>
    %11 = arith.maximumf %9, %10 : vector<64x128xf32>
    %c136 = arith.constant 136 : index
    %c0_10 = arith.constant 0 : index
    %12 = vector.load %arg4[%c136, %c0_10] : memref<816x128xf32, #tpu.memory_space<vmem>>, vector<128x128xf32>
    %cst_11 = arith.constant dense<0.000000e+00> : vector<64x128xf32>
    %13 = tpu.matmul %11, %12, %cst_11 {dimension_numbers = #tpu.dot_dimension_numbers<[1], [0], [0], [1], [0, 0, 1, 1], [], []>} : vector<64x128xf32>, vector<128x128xf32>, vector<64x128xf32> -> vector<64x128xf32>
    %c264 = arith.constant 264 : index
    %c0_12 = arith.constant 0 : index
    %14 = vector.load %arg4[%c264, %c0_12] : memref<816x128xf32, #tpu.memory_space<vmem>>, vector<1x128xf32>
    %15 = vector.broadcast %14 : vector<1x128xf32> to vector<64x128xf32>
    %16 = arith.addf %13, %15 : vector<64x128xf32>
    %17 = arith.addf %16, %11 : vector<64x128xf32>
    %cst_13 = arith.constant 0.000000e+00 : f32
    %18 = vector.broadcast %cst_13 : f32 to vector<64x128xf32>
    %19 = arith.maximumf %17, %18 : vector<64x128xf32>
    %c272 = arith.constant 272 : index
    %c0_14 = arith.constant 0 : index
    %20 = vector.load %arg4[%c272, %c0_14] : memref<816x128xf32, #tpu.memory_space<vmem>>, vector<128x128xf32>
    %cst_15 = arith.constant dense<0.000000e+00> : vector<64x128xf32>
    %21 = tpu.matmul %19, %20, %cst_15 {dimension_numbers = #tpu.dot_dimension_numbers<[1], [0], [0], [1], [0, 0, 1, 1], [], []>} : vector<64x128xf32>, vector<128x128xf32>, vector<64x128xf32> -> vector<64x128xf32>
    %c400 = arith.constant 400 : index
    %c0_16 = arith.constant 0 : index
    %22 = vector.load %arg4[%c400, %c0_16] : memref<816x128xf32, #tpu.memory_space<vmem>>, vector<1x128xf32>
    %23 = vector.broadcast %22 : vector<1x128xf32> to vector<64x128xf32>
    %24 = arith.addf %21, %23 : vector<64x128xf32>
    %25 = vector.extract_strided_slice %24 {offsets = [0, 0], sizes = [64, 16], strides = [1, 1]} : vector<64x128xf32> to vector<64x16xf32>
    %26 = vector.extract_strided_slice %24 {offsets = [0, 16], sizes = [64, 16], strides = [1, 1]} : vector<64x128xf32> to vector<64x16xf32>
    %cst_17 = arith.constant 5.000000e-01 : f32
    %27 = vector.broadcast %cst_17 : f32 to vector<64x16xf32>
    %28 = arith.mulf %27, %26 : vector<64x16xf32>
    %29 = math.exp %28 : vector<64x16xf32>
    %30 = arith.mulf %2, %29 : vector<64x16xf32>
    %31 = arith.addf %30, %25 : vector<64x16xf32>
    %cst_18 = arith.constant 0.000000e+00 : f32
    %32 = vector.broadcast %cst_18 : f32 to vector<64x104xf32>
    %33 = tpu.concatenate %31, %1, %32 in 1 : vector<64x16xf32>, vector<64x8xf32>, vector<64x104xf32> -> vector<64x128xf32>
    %c408 = arith.constant 408 : index
    %c0_19 = arith.constant 0 : index
    %34 = vector.load %arg4[%c408, %c0_19] : memref<816x128xf32, #tpu.memory_space<vmem>>, vector<128x128xf32>
    %cst_20 = arith.constant dense<0.000000e+00> : vector<64x128xf32>
    %35 = tpu.matmul %33, %34, %cst_20 {dimension_numbers = #tpu.dot_dimension_numbers<[1], [0], [0], [1], [0, 0, 1, 1], [], []>} : vector<64x128xf32>, vector<128x128xf32>, vector<64x128xf32> -> vector<64x128xf32>
    %c536 = arith.constant 536 : index
    %c0_21 = arith.constant 0 : index
    %36 = vector.load %arg4[%c536, %c0_21] : memref<816x128xf32, #tpu.memory_space<vmem>>, vector<1x128xf32>
    %37 = vector.broadcast %36 : vector<1x128xf32> to vector<64x128xf32>
    %38 = arith.addf %35, %37 : vector<64x128xf32>
    %cst_22 = arith.constant 0.000000e+00 : f32
    %39 = vector.broadcast %cst_22 : f32 to vector<64x128xf32>
    %40 = arith.maximumf %38, %39 : vector<64x128xf32>
    %c544 = arith.constant 544 : index
    %c0_23 = arith.constant 0 : index
    %41 = vector.load %arg4[%c544, %c0_23] : memref<816x128xf32, #tpu.memory_space<vmem>>, vector<128x128xf32>
    %cst_24 = arith.constant dense<0.000000e+00> : vector<64x128xf32>
    %42 = tpu.matmul %40, %41, %cst_24 {dimension_numbers = #tpu.dot_dimension_numbers<[1], [0], [0], [1], [0, 0, 1, 1], [], []>} : vector<64x128xf32>, vector<128x128xf32>, vector<64x128xf32> -> vector<64x128xf32>
    %c672 = arith.constant 672 : index
    %c0_25 = arith.constant 0 : index
    %43 = vector.load %arg4[%c672, %c0_25] : memref<816x128xf32, #tpu.memory_space<vmem>>, vector<1x128xf32>
    %44 = vector.broadcast %43 : vector<1x128xf32> to vector<64x128xf32>
    %45 = arith.addf %42, %44 : vector<64x128xf32>
    %46 = arith.addf %45, %40 : vector<64x128xf32>
    %cst_26 = arith.constant 0.000000e+00 : f32
    %47 = vector.broadcast %cst_26 : f32 to vector<64x128xf32>
    %48 = arith.maximumf %46, %47 : vector<64x128xf32>
    %c680 = arith.constant 680 : index
    %c0_27 = arith.constant 0 : index
    %49 = vector.load %arg4[%c680, %c0_27] : memref<816x128xf32, #tpu.memory_space<vmem>>, vector<128x128xf32>
    %cst_28 = arith.constant dense<0.000000e+00> : vector<64x128xf32>
    %50 = tpu.matmul %48, %49, %cst_28 {dimension_numbers = #tpu.dot_dimension_numbers<[1], [0], [0], [1], [0, 0, 1, 1], [], []>} : vector<64x128xf32>, vector<128x128xf32>, vector<64x128xf32> -> vector<64x128xf32>
    %c808 = arith.constant 808 : index
    %c0_29 = arith.constant 0 : index
    %51 = vector.load %arg4[%c808, %c0_29] : memref<816x128xf32, #tpu.memory_space<vmem>>, vector<1x128xf32>
    %52 = vector.broadcast %51 : vector<1x128xf32> to vector<64x128xf32>
    %53 = arith.addf %50, %52 : vector<64x128xf32>
    %54 = vector.extract_strided_slice %53 {offsets = [0, 0], sizes = [64, 32], strides = [1, 1]} : vector<64x128xf32> to vector<64x32xf32>
    %cst_30 = arith.constant 0.000000e+00 : f32
    %55 = vector.broadcast %cst_30 : f32 to vector<64x64xf32>
    %56 = tpu.concatenate %54, %25, %26, %55 in 1 : vector<64x32xf32>, vector<64x16xf32>, vector<64x16xf32>, vector<64x64xf32> -> vector<64x128xf32>
    %c0_31 = arith.constant 0 : index
    %c0_32 = arith.constant 0 : index
    %57 = vector.load %arg5[%c0_31, %c0_32] : memref<64x128xf32, #tpu.memory_space<vmem>>, vector<64x128xf32>
    tpu.vector_store %arg5[%c0_31, %c0_32], %56 {strides = array<i32>} : memref<64x128xf32, #tpu.memory_space<vmem>>, vector<64x128xf32>,
    return
  }
  func.func @transform_0(%arg0: i32) -> (i32, i32) {
    %c0_i32 = arith.constant 0 : i32
    %c0_i32_0 = arith.constant 0 : i32
    return %arg0, %c0_i32 : i32, i32
  }
  func.func @transform_1(%arg0: i32) -> (i32, i32) {
    %c0_i32 = arith.constant 0 : i32
    %c0_i32_0 = arith.constant 0 : i32
    return %arg0, %c0_i32 : i32, i32
  }
  func.func @transform_2(%arg0: i32) -> (i32, i32) {
    %c0_i32 = arith.constant 0 : i32
    %c0_i32_0 = arith.constant 0 : i32
    return %arg0, %c0_i32 : i32, i32
  }
  func.func @transform_3(%arg0: i32) -> (i32, i32) {
    %c0_i32 = arith.constant 0 : i32
    %c0_i32_0 = arith.constant 0 : i32
    %c0_i32_1 = arith.constant 0 : i32
    return %c0_i32, %c0_i32_0 : i32, i32
  }
  func.func @transform_4(%arg0: i32) -> (i32, i32) {
    %c0_i32 = arith.constant 0 : i32
    %c0_i32_0 = arith.constant 0 : i32
    return %arg0, %c0_i32 : i32, i32
  }
}

</mosaic_0001>

<bundles_post_ra>
// kernel: tpu_custom_call.1
= control target key start
LH: loop header
LB: loop body
LE: loop exit
PB: predicated region body
PF: predicated region fallthrough
CT: control target
= control target key end

     0   :  { %9 = vsyncpa [#allocation3], 0  ;;  %s2094_s0 = inlined_call_operand.vmem [shape: f32[64,32], index: 0, kind: input, shape index: {}]   ;;  %s2095_s1 = inlined_call_operand.vmem [shape: f32[64,8], index: 1, kind: input, shape index: {}]   ;;  %s2096_s2 = inlined_call_operand.vmem [shape: f32[64,16], index: 2, kind: input, shape index: {}]   ;;  %s2097_s3 = inlined_call_operand.hbm [shape: f32[816,128], index: 3, kind: input, shape index: {}]   ;;  %s2098_s4 = inlined_call_operand.hbm [shape: f32[64,128], index: 4, kind: output, shape index: {}]  }
   0x1   :  { %10 = vsyncpa [#allocation4], 0  ;;  %s1800_s15 = smov [#allocation2]   ;;  %s1752_s19 = scalar_lea.hbm %s2097_s3, 13056 }
   0x2   :  { %s22_s16 = sshll.u32 %s1800_s15, 4  ;;  %p1753_p0 = scmp.ne.s32.totalorder %s2097_s3, %s1752_s19  ;;  %s23_s16 = int_to_ptr.vmem [resolvable:$true] %s22_s16 }
   0x3   :  { %p1756_p1 = scmp.lt.u32.totalorder %s1752_s19, %s2097_s3 }
   0x5   :  { %p1758_p2 = pnand %p1756_p1, %p1753_p0 }
   0x7   :  { %1761 = shalt.err (!%p1758_p2)
}
   0x8   :  { %s1762_s24 = scalar_lea.vmem %s23_s16, 13056  ;;  %p1767_p4 = scmp.lt.s32.totalorder %s23_s16, %s23_s16 }
   0x9   :  { %p1763_p3 = scmp.ne.s32.totalorder %s23_s16, %s1762_s24  ;;  %p1768_p5 = scmp.lt.s32.totalorder %s1762_s24, %s1762_s24 }
   0xb   :  { %p1769_p6 = por %p1768_p5, %p1767_p4 }
   0xd   :  { %p1770_p7 = pnand %p1769_p6, %p1763_p3 }
   0xf   :  { %1773 = shalt.err (!%p1770_p7)
}
  0x10   :  { %s1801_s25 = smov 128   ;;  %s1802_s26 = smov 8  }
  0x11   :  { %28 = dma.hbm_to_vmem [thread:$0]  %s2097_s3, 13056, %s23_s16, [#allocation3], %s1801_s25, %s1801_s25, %s1802_s26  }
  0x12   :  { %1796 = dma.done.wait [#allocation3], 13056  }
  0x13   :  { %1797 = vsyncadd [#allocation3], 4294954240  ;;  %v1850_v0 = vld [vmem:[%s2095_s1] sm:$0xff]  ;;  %v1855_v1 = vld [vmem:[%s2095_s1 + $0x10] sm:$0xff]  ;;  %s1803_s7 = smov 32   ;;  %vm88_vm0 = vcmask 261120  }
  0x14   :  { %64 = vrot.lane.b32.xlu0 %v1850_v0, %s1803_s7  ;;  %68 = vrot.lane.b32.xlu1 %v1855_v1, %s1803_s7  ;;  %v106_v2 = vld [vmem:[#allocation2] sm:$0xff]  ;;  %v1864_v3 = vld [vmem:[%s2095_s1 + $0x8] sm:$0xff]  ;;  %v1869_v4 = vld [vmem:[%s2095_s1 + $0x18] sm:$0xff]  ;;  %vm97_vm1 = vcmask 326656   ;;  %s1805_s10 = smov 112   ;;  %vm604_vm2 = vcmask 130048  }
  0x15   :  { %v107_v5 = vld [vmem:[#allocation2 + $0x8] sm:$0xff]  ;;  %v108_v6 = vld [vmem:[#allocation2 + $0x10] sm:$0xff]  ;;  %v109_v7 = vld [vmem:[#allocation2 + $0x18] sm:$0xff]  ;;  %vm613_vm3 = vcmask 195584   ;;  %vm1064_vm4 = vcmask 392192   ;;  %vm1073_vm5 = vcmask 523264  }
  0x16   :  { %v1537_v8 = vpack.c.bf16 %v107_v5, %v106_v2  ;;  %v1541_v9 = vpack.c.bf16 %v109_v7, %v108_v6  ;;  %v110_v10 = vld [vmem:[#allocation2 + $0x20] sm:$0xff]  ;;  %v111_v11 = vld [vmem:[#allocation2 + $0x28] sm:$0xff]  ;;  %v112_v15 = vld [vmem:[#allocation2 + $0x30] sm:$0xff] }
  0x17   :  { %v1878_v12 = vld [vmem:[%s2095_s1 + $0x20] sm:$0xff]  ;;  %v1883_v13 = vld [vmem:[%s2095_s1 + $0x28] sm:$0xff]  ;;  %v1545_v14 = vpack.c.bf16 %v111_v11, %v110_v10  ;;  %v113_v16 = vld [vmem:[#allocation2 + $0x38] sm:$0xff] }
  0x18   :  { %66 = vrot.lane.b32.xlu0 %v1864_v3, %s1803_s7  ;;  %70 = vrot.lane.b32.xlu1 %v1869_v4, %s1803_s7  ;;  %v240_v17 = vld [vmem:[#allocation2 + $0x88] sm:$0xff]  ;;  %v1892_v18 = vld [vmem:[%s2095_s1 + $0x30] sm:$0xff]  ;;  %v1897_v19 = vld [vmem:[%s2095_s1 + $0x38] sm:$0xff]  ;;  %v1549_v23 = vpack.c.bf16 %v113_v16, %v112_v15 }
  0x19   :  { %1538 = vmatprep.subr.bf16.mxu0 %v1537_v8  ;;  %v241_v20 = vld [vmem:[#allocation2 + $0x90] sm:$0xff]  ;;  %v242_v21 = vld [vmem:[#allocation2 + $0x98] sm:$0xff]  ;;  %v243_v22 = vld [vmem:[#allocation2 + $0xa0] sm:$0xff] }
  0x1a   :  { %1540 = vmatpush3.bf16.msra.mxu0 %v1537_v8  ;;  %v114_v24 = vld [vmem:[#allocation2 + $0x40] sm:$0xff]  ;;  %v1569_v25 = vpack.c.bf16 %v241_v20, %v240_v17  ;;  %v1573_v26 = vpack.c.bf16 %v243_v22, %v242_v21  ;;  %v115_v27 = vld [vmem:[#allocation2 + $0x48] sm:$0xff]  ;;  %v245_v29 = vld [vmem:[#allocation2 + $0xb0] sm:$0xff] }
  0x1b   :  { %1542 = vmatprep.subr.bf16.mxu0 %v1541_v9  ;;  %v244_v28 = vld [vmem:[#allocation2 + $0xa8] sm:$0xff]  ;;  %v1553_v30 = vpack.c.bf16 %v115_v27, %v114_v24  ;;  %v116_v31 = vld [vmem:[#allocation2 + $0x50] sm:$0xff]  ;;  %v117_v33 = vld [vmem:[#allocation2 + $0x58] sm:$0xff] }
  0x1c   :  { %72 = vrot.lane.b32.xlu0 %v1878_v12, %s1803_s7  ;;  %74 = vrot.lane.b32.xlu1 %v1883_v13, %s1803_s7  ;;  %v1577_v32 = vpack.c.bf16 %v245_v29, %v244_v28  ;;  %v246_v34 = vld [vmem:[#allocation2 + $0xb8] sm:$0xff]  ;;  %v247_v35 = vld [vmem:[#allocation2 + $0xc0] sm:$0xff]  ;;  %v1557_v36 = vpack.c.bf16 %v117_v33, %v116_v31  ;;  %v119_v39 = vld [vmem:[#allocation2 + $0x68] sm:$0xff] }
  0x1d   :  { %1570 = vmatprep.subr.bf16.mxu1 %v1569_v25  ;;  %v118_v37 = vld [vmem:[#allocation2 + $0x60] sm:$0xff]  ;;  %v1581_v38 = vpack.c.bf16 %v247_v35, %v246_v34  ;;  %v248_v40 = vld [vmem:[#allocation2 + $0xc8] sm:$0xff]  ;;  %v249_v41 = vld [vmem:[#allocation2 + $0xd0] sm:$0xff] }
  0x1e   :  { %1544 = vmatpush3.bf16.msra.mxu0 %v1541_v9  ;;  %1572 = vmatpush3.bf16.msra.mxu1 %v1569_v25  ;;  %v1561_v42 = vpack.c.bf16 %v119_v39, %v118_v37  ;;  %v120_v43 = vld [vmem:[#allocation2 + $0x70] sm:$0xff]  ;;  %v1585_v44 = vpack.c.bf16 %v249_v41, %v248_v40  ;;  %v121_v45 = vld [vmem:[#allocation2 + $0x78] sm:$0xff]  ;;  %v251_v47 = vld [vmem:[#allocation2 + $0xe0] sm:$0xff] }
  0x1f   :  { %1546 = vmatprep.subr.bf16.mxu0 %v1545_v14  ;;  %1574 = vmatprep.subr.bf16.mxu1 %v1573_v26  ;;  %v250_v46 = vld [vmem:[#allocation2 + $0xd8] sm:$0xff]  ;;  %v1565_v48 = vpack.c.bf16 %v121_v45, %v120_v43  ;;  %v252_v50 = vld [vmem:[#allocation2 + $0xe8] sm:$0xff]  ;;  %v253_v51 = vld [vmem:[#allocation2 + $0xf0] sm:$0xff] }
  0x20   :  { %76 = vrot.lane.b32.xlu0 %v1892_v18, %s1803_s7  ;;  %78 = vrot.lane.b32.xlu1 %v1897_v19, %s1803_s7  ;;  %v1589_v49 = vpack.c.bf16 %v251_v47, %v250_v46  ;;  %v1593_v52 = vpack.c.bf16 %v253_v51, %v252_v50  ;;  %v32_v53 = vld [vmem:[%s2094_s0] sm:$0xff]  ;;  %v34_v57 = vld [vmem:[%s2094_s0 + $0x10] sm:$0xff]  ;;  %v254_v21 = vld [vmem:[#allocation2 + $0xf8] sm:$0xff] }
  0x21   :  { %v33_v58 = vld [vmem:[%s2094_s0 + $0x8] sm:$0xff]  ;;  %v35_v62 = vld [vmem:[%s2094_s0 + $0x18] sm:$0xff]  ;;  %v36_v2 = vld [vmem:[%s2094_s0 + $0x20] sm:$0xff] }
  0x22   :  { %1548 = vmatpush3.bf16.msra.mxu0 %v1545_v14  ;;  %1576 = vmatpush3.bf16.msra.mxu1 %v1573_v26  ;;  %v37_v8 = vld [vmem:[%s2094_s0 + $0x28] sm:$0xff]  ;;  %v38_v10 = vld [vmem:[%s2094_s0 + $0x30] sm:$0xff]  ;;  %v39_v16 = vld [vmem:[%s2094_s0 + $0x38] sm:$0xff]  ;;  %s1804_s0 = smov 16  }
  0x23   :  { %1550 = vmatprep.subr.bf16.mxu0 %v1549_v23  ;;  %1578 = vmatprep.subr.bf16.mxu1 %v1577_v32  ;;  %v255_v22 = vld [vmem:[#allocation2 + $0x100] sm:$0xff]  ;;  %v382_v24 = vld [vmem:[#allocation2 + $0x110] sm:$0xff]  ;;  %v383_v25 = vld [vmem:[#allocation2 + $0x118] sm:$0xff] }
  0x24   :  { %v384_v26 = vld [vmem:[#allocation2 + $0x120] sm:$0xff]  ;;  %v1601_v27 = vpack.c.bf16 %v383_v25, %v382_v24  ;;  %v385_v28 = vld [vmem:[#allocation2 + $0x128] sm:$0xff]  ;;  %v387_v31 = vld [vmem:[#allocation2 + $0x138] sm:$0xff]  ;;  %580 = vrot.lane.b32.xlu1 %v1850_v0, %s1804_s0 }
  0x25   :  { %v1605_v29 = vpack.c.bf16 %v385_v28, %v384_v26  ;;  %v388_v33 = vld [vmem:[#allocation2 + $0x140] sm:$0xff]  ;;  %v389_v34 = vld [vmem:[#allocation2 + $0x148] sm:$0xff]  ;;  %v391_v37 = vld [vmem:[#allocation2 + $0x158] sm:$0xff] }
  0x26   :  { %1552 = vmatpush3.bf16.msra.mxu0 %v1549_v23  ;;  %1580 = vmatpush3.bf16.msra.mxu1 %v1577_v32  ;;  %v1597_v23 = vpack.c.bf16 %v255_v22, %v254_v21  ;;  %v1613_v35 = vpack.c.bf16 %v389_v34, %v388_v33  ;;  %v392_v39 = vld [vmem:[#allocation2 + $0x160] sm:$0xff]  ;;  %v393_v40 = vld [vmem:[#allocation2 + $0x168] sm:$0xff]  ;;  %v629_v0 = vld [vmem:[#allocation2 + $0x1d0] sm:$0xff] }
  0x27   :  { %1554 = vmatprep.subr.bf16.mxu0 %v1553_v30  ;;  %1582 = vmatprep.subr.bf16.mxu1 %v1581_v38  ;;  %v1621_v41 = vpack.c.bf16 %v393_v40, %v392_v39 }
  0x28   :  { %582 = vrot.lane.b32.xlu1 %v1864_v3, %s1804_s0 }
  0x2a   :  { %1556 = vmatpush3.bf16.msra.mxu0 %v1553_v30  ;;  %1584 = vmatpush3.bf16.msra.mxu1 %v1581_v38  ;;  %v386_v30 = vld [vmem:[#allocation2 + $0x130] sm:$0xff] }
  0x2b   :  { %1558 = vmatprep.subr.bf16.mxu0 %v1557_v36  ;;  %1586 = vmatprep.subr.bf16.mxu1 %v1585_v44  ;;  %v1609_v32 = vpack.c.bf16 %v387_v31, %v386_v30 }
  0x2c   :  { %584 = vrot.lane.b32.xlu1 %v1855_v1, %s1804_s0 }
  0x2e   :  { %1560 = vmatpush3.bf16.msra.mxu0 %v1557_v36  ;;  %1588 = vmatpush3.bf16.msra.mxu1 %v1585_v44  ;;  %v390_v36 = vld [vmem:[#allocation2 + $0x150] sm:$0xff] }
  0x2f   :  { %1562 = vmatprep.subr.bf16.mxu0 %v1561_v42  ;;  %1590 = vmatprep.subr.bf16.mxu1 %v1589_v49  ;;  %v1617_v38 = vpack.c.bf16 %v391_v37, %v390_v36 }
  0x32   :  { %1564 = vmatpush3.bf16.msra.mxu0 %v1561_v42  ;;  %1592 = vmatpush3.bf16.msra.mxu1 %v1589_v49  ;;  %v1107_v42 = vld [vmem:[#allocation2 + $0x80] ss:$0 sm:$0xff] }
  0x33   :  { %1566 = vmatprep.subr.bf16.mxu0 %v1565_v48  ;;  %1594 = vmatprep.subr.bf16.mxu1 %v1593_v52 }
  0x36   :  { %1568 = vmatpush3.bf16.msra.mxu0 %v1565_v48  ;;  %1596 = vmatpush3.bf16.msra.mxu1 %v1593_v52 }
  0x37   :  { %1598 = vmatprep.subr.bf16.mxu1 %v1597_v23  ;;  %1602 = vmatprep.subr.bf16.mxu0 %v1601_v27 }
  0x3a   :  { %1600 = vmatpush3.bf16.msra.mxu1 %v1597_v23 }
  0x86   :  { %v65_v54 = vpop.permute.xlu0 %64  ;;  %v69_v55 = vpop.permute.xlu1 %68 }
  0x87   :  { %v89_v56 = vsel %vm88_vm0, %v32_v53, %v65_v54  ;;  %v91_v59 = vsel %vm88_vm0, %v34_v57, %v69_v55 }
  0x88   :  { %1305 = vmatprep.mubr.msk.f32.mxu0 %vm97_vm1, %v89_v56 }
  0x8a   :  { %v67_v60 = vpop.permute.xlu0 %66  ;;  %v71_v61 = vpop.permute.xlu1 %70 }
  0x8b   :  { %v90_v63 = vsel %vm88_vm0, %v33_v58, %v67_v60  ;;  %v92_v5 = vsel %vm88_vm0, %v35_v62, %v71_v61 }
  0x8c   :  { %1306 = vmatmul.mubr.msk.f32.vlgmr.msra.gmra.mrb[0].mxu0 %vm97_vm1, %v90_v63 }
  0x8d   :  { %1308 = vmatprep.mubr.msk.f32.mxu0 %vm97_vm1, %v91_v59  ;;  %1604 = vmatpush3.bf16.msra.mxu0 %v1601_v27 }
  0x8e   :  { %v73_v6 = vpop.permute.xlu0 %72  ;;  %v75_v7 = vpop.permute.xlu1 %74  ;;  %1606 = vmatprep.subr.bf16.mxu0 %v1605_v29 }
  0x8f   :  { %v93_v9 = vsel %vm88_vm0, %v36_v2, %v73_v6  ;;  %v94_v11 = vsel %vm88_vm0, %v37_v8, %v75_v7  ;;  %v394_v7 = vld [vmem:[#allocation2 + $0x170] sm:$0xff]  ;;  %v395_v8 = vld [vmem:[#allocation2 + $0x178] sm:$0xff] }
  0x90   :  { %1309 = vmatmul.mubr.msk.f32.gmra.mrb[2].mxu0 %vm97_vm1, %v92_v5 }
  0x91   :  { %1311 = vmatprep.mubr.msk.f32.mxu0 %vm97_vm1, %v93_v9  ;;  %1608 = vmatpush3.bf16.msra.mxu0 %v1605_v29  ;;  %v1625_v9 = vpack.c.bf16 %v395_v8, %v394_v7  ;;  %v1117_v8 = vld [vmem:[#allocation2 + $0x190] ss:$0 sm:$0xff] }
  0x92   :  { %v77_v14 = vpop.permute.xlu0 %76  ;;  %v79_v15 = vpop.permute.xlu1 %78  ;;  %1610 = vmatprep.subr.bf16.mxu0 %v1609_v32 }
  0x93   :  { %v95_v17 = vsel %vm88_vm0, %v38_v10, %v77_v14  ;;  %v96_v20 = vsel %vm88_vm0, %v39_v16, %v79_v15  ;;  %v396_v10 = vld [vmem:[#allocation2 + $0x180] sm:$0xff]  ;;  %v1116_v15 = vld [vmem:[#allocation2 + $0x108] ss:$0 sm:$0xff] }
  0x94   :  { %1312 = vmatmul.mubr.msk.f32.gmra.mrb[4].mxu0 %vm97_vm1, %v94_v11  ;;  %v397_v11 = vld [vmem:[#allocation2 + $0x188] sm:$0xff] }
  0x95   :  { %1314 = vmatprep.mubr.msk.f32.mxu0 %vm97_vm1, %v95_v17  ;;  %1612 = vmatpush3.bf16.msra.mxu0 %v1609_v32  ;;  %v1629_v14 = vpack.c.bf16 %v397_v11, %v396_v10 }
  0x96   :  { %1614 = vmatprep.subr.bf16.mxu0 %v1613_v35 }
  0x98   :  { %1315 = vmatmul.mubr.msk.f32.gmra.mrb[6].mxu0 %vm97_vm1, %v96_v20 }
  0x99   :  { %1616 = vmatpush3.bf16.msra.mxu0 %v1613_v35 }
  0x9a   :  { %1618 = vmatprep.subr.bf16.mxu0 %v1617_v38 }
  0x9d   :  { %1620 = vmatpush3.bf16.msra.mxu0 %v1617_v38 }
  0x9e   :  { %1622 = vmatprep.subr.bf16.mxu0 %v1621_v41 }
  0xa1   :  { %1624 = vmatpush3.bf16.msra.mxu0 %v1621_v41 }
  0xa2   :  { %1626 = vmatprep.subr.bf16.mxu0 %v1625_v9 }
  0xa5   :  { %1628 = vmatpush3.bf16.msra.mxu0 %v1625_v9 }
  0xa6   :  { %1630 = vmatprep.subr.bf16.mxu0 %v1629_v14 }
  0xa9   :  { %1632 = vmatpush3.bf16.msra.mxu0 %v1629_v14 }
 0x15f   :  { %v1307_v43 = vpop.f32.mrb[0].mxu0 }
 0x160   :  { %v199_v44 = vadd.f32 %v1307_v43, %v1107_v42  ;;  %v193_v45 = vpop.f32.mrb[1].mxu0 }
 0x161   :  { %v194_v46 = vadd.f32 %v1107_v42, %v193_v45 }
 0x162   :  { %v233_v49 = vmax.f32 %v199_v44, 0.0 }
 0x163   :  { %v232_v47 = vmax.f32 %v194_v46, 0.0  ;;  %v1310_v48 = vpop.f32.mrb[2].mxu0 }
 0x164   :  { %v209_v50 = vadd.f32 %v1310_v48, %v1107_v42  ;;  %v203_v51 = vpop.f32.mrb[3].mxu0 }
 0x165   :  { %v204_v52 = vadd.f32 %v1107_v42, %v203_v51  ;;  %1349 = vmatprep.mubr.f32.mxu1 %v232_v47  ;;  %v623_v51 = vld [vmem:[#allocation2 + $0x1a0] sm:$0xff] }
 0x166   :  { %v235_v53 = vmax.f32 %v209_v50, 0.0  ;;  %1350 = vmatmul.mubr.f32.vlgmr.msra.gmra.mrb[0].mxu1 %v233_v49  ;;  %v622_v50 = vld [vmem:[#allocation2 + $0x198] sm:$0xff] }
 0x167   :  { %v234_v54 = vmax.f32 %v204_v52, 0.0  ;;  %v1313_v55 = vpop.f32.mrb[4].mxu0  ;;  %v624_v52 = vld [vmem:[#allocation2 + $0x1a8] sm:$0xff] }
 0x168   :  { %v219_v56 = vadd.f32 %v1313_v55, %v1107_v42  ;;  %v213_v57 = vpop.f32.mrb[5].mxu0 }
 0x169   :  { %v214_v58 = vadd.f32 %v1107_v42, %v213_v57  ;;  %1352 = vmatprep.mubr.f32.mxu1 %v234_v54  ;;  %v627_v57 = vld [vmem:[#allocation2 + $0x1c0] sm:$0xff] }
 0x16a   :  { %v237_v59 = vmax.f32 %v219_v56, 0.0  ;;  %1353 = vmatmul.mubr.f32.gmra.mrb[2].mxu1 %v235_v53  ;;  %v626_v56 = vld [vmem:[#allocation2 + $0x1b8] sm:$0xff] }
 0x16b   :  { %v236_v60 = vmax.f32 %v214_v58, 0.0  ;;  %v1316_v61 = vpop.f32.mrb[6].mxu0  ;;  %v1641_v58 = vpack.c.bf16 %v627_v57, %v626_v56  ;;  %v759_v56 = vld [vmem:[#allocation2 + $0x238] sm:$0xff] }
 0x16c   :  { %v229_v62 = vadd.f32 %v1316_v61, %v1107_v42  ;;  %v223_v63 = vpop.f32.mrb[7].mxu0  ;;  %v631_v61 = vld [vmem:[#allocation2 + $0x1e0] sm:$0xff] }
 0x16d   :  { %v224_v2 = vadd.f32 %v1107_v42, %v223_v63  ;;  %1355 = vmatprep.mubr.f32.mxu1 %v236_v60  ;;  %v633_v63 = vld [vmem:[#allocation2 + $0x1f0] sm:$0xff] }
 0x16e   :  { %v239_v5 = vmax.f32 %v229_v62, 0.0  ;;  %1356 = vmatmul.mubr.f32.gmra.mrb[4].mxu1 %v237_v59  ;;  %v632_v62 = vld [vmem:[#allocation2 + $0x1e8] sm:$0xff] }
 0x16f   :  { %v238_v6 = vmax.f32 %v224_v2, 0.0  ;;  %v1653_v2 = vpack.c.bf16 %v633_v63, %v632_v62  ;;  %v766_v63 = vld [vmem:[#allocation2 + $0x270] sm:$0xff] }
 0x171   :  { %1358 = vmatprep.mubr.f32.mxu1 %v238_v6 }
 0x172   :  { %1359 = vmatmul.mubr.f32.gmra.mrb[6].mxu1 %v239_v5 }
 0x239   :  { %v1351_v16 = vpop.f32.mrb[0].mxu1 }
 0x23a   :  { %v333_v17 = vadd.f32 %v1351_v16, %v1116_v15  ;;  %v327_v20 = vpop.f32.mrb[1].mxu1 }
 0x23b   :  { %v328_v21 = vadd.f32 %v1116_v15, %v327_v20 }
 0x23c   :  { %v367_v22 = vadd.f32 %v333_v17, %v233_v49 }
 0x23d   :  { %v366_v23 = vadd.f32 %v328_v21, %v232_v47  ;;  %v1354_v24 = vpop.f32.mrb[2].mxu1 }
 0x23e   :  { %v343_v25 = vadd.f32 %v1354_v24, %v1116_v15  ;;  %v337_v26 = vpop.f32.mrb[3].mxu1  ;;  %v375_v29 = vmax.f32 %v367_v22, 0.0  ;;  %v637_v24 = vld [vmem:[#allocation2 + $0x210] sm:$0xff] }
 0x23f   :  { %v374_v27 = vmax.f32 %v366_v23, 0.0  ;;  %v338_v28 = vadd.f32 %v1116_v15, %v337_v26  ;;  %v636_v23 = vld [vmem:[#allocation2 + $0x208] sm:$0xff] }
 0x240   :  { %v369_v30 = vadd.f32 %v343_v25, %v235_v53  ;;  %v1633_v53 = vpack.c.bf16 %v623_v51, %v622_v50 }
 0x241   :  { %v368_v31 = vadd.f32 %v338_v28, %v234_v54  ;;  %v1357_v32 = vpop.f32.mrb[4].mxu1  ;;  %1393 = vmatprep.mubr.f32.mxu0 %v374_v27  ;;  %v625_v54 = vld [vmem:[#allocation2 + $0x1b0] sm:$0xff]  ;;  %v1661_v27 = vpack.c.bf16 %v637_v24, %v636_v23 }
 0x242   :  { %v353_v33 = vadd.f32 %v1357_v32, %v1116_v15  ;;  %v347_v34 = vpop.f32.mrb[5].mxu1  ;;  %1394 = vmatmul.mubr.f32.vlgmr.msra.gmra.mrb[8].mxu0 %v375_v29  ;;  %v377_v37 = vmax.f32 %v369_v30, 0.0  ;;  %v1637_v55 = vpack.c.bf16 %v625_v54, %v624_v52  ;;  %1634 = vmatprep.subr.bf16.mxu1 %v1633_v53  ;;  %v758_v54 = vld [vmem:[#allocation2 + $0x230] sm:$0xff] }
 0x243   :  { %v376_v35 = vmax.f32 %v368_v31, 0.0  ;;  %v348_v36 = vadd.f32 %v1116_v15, %v347_v34  ;;  %1636 = vmatpush3.bf16.msra.mxu1 %v1633_v53  ;;  %v1669_v57 = vpack.c.bf16 %v759_v56, %v758_v54 }
 0x244   :  { %v371_v38 = vadd.f32 %v353_v33, %v237_v59  ;;  %1638 = vmatprep.subr.bf16.mxu1 %v1637_v55  ;;  %v628_v59 = vld [vmem:[#allocation2 + $0x1c8] sm:$0xff] }
 0x245   :  { %v370_v39 = vadd.f32 %v348_v36, %v236_v60  ;;  %v1360_v40 = vpop.f32.mrb[6].mxu1  ;;  %1396 = vmatprep.mubr.f32.mxu0 %v376_v35  ;;  %v1645_v3 = vpack.c.bf16 %v629_v0, %v628_v59  ;;  %v630_v60 = vld [vmem:[#allocation2 + $0x1d8] sm:$0xff]  ;;  %v761_v59 = vld [vmem:[#allocation2 + $0x248] sm:$0xff] }
 0x246   :  { %v363_v41 = vadd.f32 %v1360_v40, %v1116_v15  ;;  %v357_v42 = vpop.f32.mrb[7].mxu1  ;;  %1397 = vmatmul.mubr.f32.gmra.mrb[10].mxu0 %v377_v37  ;;  %v379_v45 = vmax.f32 %v371_v38, 0.0  ;;  %v1649_v1 = vpack.c.bf16 %v631_v61, %v630_v60  ;;  %v764_v61 = vld [vmem:[#allocation2 + $0x260] sm:$0xff] }
 0x247   :  { %v378_v43 = vmax.f32 %v370_v39, 0.0  ;;  %v358_v44 = vadd.f32 %v1116_v15, %v357_v42  ;;  %1640 = vmatpush3.bf16.msra.mxu1 %v1637_v55 }
 0x248   :  { %v373_v46 = vadd.f32 %v363_v41, %v239_v5  ;;  %1642 = vmatprep.subr.bf16.mxu1 %v1641_v58  ;;  %v634_v5 = vld [vmem:[#allocation2 + $0x1f8] sm:$0xff] }
 0x249   :  { %v372_v47 = vadd.f32 %v358_v44, %v238_v6  ;;  %1399 = vmatprep.mubr.f32.mxu0 %v378_v43  ;;  %v635_v6 = vld [vmem:[#allocation2 + $0x200] sm:$0xff] }
 0x24a   :  { %1400 = vmatmul.mubr.f32.gmra.mrb[12].mxu0 %v379_v45  ;;  %v381_v49 = vmax.f32 %v373_v46, 0.0  ;;  %v1657_v7 = vpack.c.bf16 %v635_v6, %v634_v5  ;;  %v768_v6 = vld [vmem:[#allocation2 + $0x280] sm:$0xff] }
 0x24b   :  { %v380_v48 = vmax.f32 %v372_v47, 0.0  ;;  %1644 = vmatpush3.bf16.msra.mxu1 %v1641_v58  ;;  %v760_v58 = vld [vmem:[#allocation2 + $0x240] sm:$0xff] }
 0x24c   :  { %1646 = vmatprep.subr.bf16.mxu1 %v1645_v3  ;;  %v1673_v0 = vpack.c.bf16 %v761_v59, %v760_v58  ;;  %v770_v59 = vld [vmem:[#allocation2 + $0x290] sm:$0xff] }
 0x24d   :  { %1402 = vmatprep.mubr.f32.mxu0 %v380_v48 }
 0x24e   :  { %1403 = vmatmul.mubr.f32.gmra.mrb[14].mxu0 %v381_v49 }
 0x24f   :  { %1648 = vmatpush3.bf16.msra.mxu1 %v1645_v3  ;;  %v763_v3 = vld [vmem:[#allocation2 + $0x258] sm:$0xff] }
 0x250   :  { %1650 = vmatprep.subr.bf16.mxu1 %v1649_v1 }
 0x253   :  { %1652 = vmatpush3.bf16.msra.mxu1 %v1649_v1  ;;  %v765_v1 = vld [vmem:[#allocation2 + $0x268] sm:$0xff] }
 0x254   :  { %1654 = vmatprep.subr.bf16.mxu1 %v1653_v2  ;;  %v1681_v62 = vpack.c.bf16 %v765_v1, %v764_v61 }
 0x257   :  { %1656 = vmatpush3.bf16.msra.mxu1 %v1653_v2  ;;  %v767_v2 = vld [vmem:[#allocation2 + $0x278] sm:$0xff] }
 0x258   :  { %1658 = vmatprep.subr.bf16.mxu1 %v1657_v7  ;;  %v1685_v5 = vpack.c.bf16 %v767_v2, %v766_v63  ;;  %v903_v63 = vld [vmem:[#allocation2 + $0x2d0] sm:$0xff] }
 0x25b   :  { %1660 = vmatpush3.bf16.msra.mxu1 %v1657_v7  ;;  %v769_v7 = vld [vmem:[#allocation2 + $0x288] sm:$0xff] }
 0x25c   :  { %1662 = vmatprep.subr.bf16.mxu1 %v1661_v27 }
 0x25f   :  { %1664 = vmatpush3.bf16.msra.mxu1 %v1661_v27 }
 0x315   :  { %v1395_v9 = vpop.f32.mrb[8].mxu0 }
 0x316   :  { %v1949_v10 = vadd.f32 %v1395_v9, %v1117_v8  ;;  %v469_v11 = vpop.f32.mrb[9].mxu0  ;;  %v581_v9 = vpop.permute.xlu1 %580 }
 0x317   :  { %v1951_v14 = vadd.f32 %v1117_v8, %v469_v11 }
 0x318   :  { %v509_v15 = vmul.f32 0.5, %v1949_v10 }
 0x319   :  { %v508_v16 = vmul.f32 0.5, %v1951_v14  ;;  %v1398_v17 = vpop.f32.mrb[10].mxu0 }
 0x31a   :  { %v518_v20 = vmul.f32 1.442695, %v509_v15  ;;  %v1955_v21 = vadd.f32 %v1398_v17, %v1117_v8  ;;  %v479_v22 = vpop.f32.mrb[11].mxu0  ;;  %v583_v11 = vpop.permute.xlu1 %582  ;;  %v48_v17 = vld [vmem:[%s2096_s2] sm:$0xff] }
 0x31b   :  { %v516_v25 = vmul.f32 1.442695, %v508_v16  ;;  %v1957_v26 = vadd.f32 %v1117_v8, %v479_v22  ;;  %v49_v16 = vld [vmem:[%s2096_s2 + $0x8] sm:$0xff] }
 0x31c   :  { %1736 = vpow2.f32 %v518_v20  ;;  %v511_v28 = vmul.f32 0.5, %v1955_v21 }
 0x31d   :  { %1738 = vpow2.f32 %v516_v25  ;;  %v510_v29 = vmul.f32 0.5, %v1957_v26  ;;  %v1401_v30 = vpop.f32.mrb[12].mxu0 }
 0x31e   :  { %v522_v31 = vmul.f32 1.442695, %v511_v28  ;;  %v1961_v32 = vadd.f32 %v1401_v30, %v1117_v8  ;;  %v489_v33 = vpop.f32.mrb[13].mxu0  ;;  %v585_v15 = vpop.permute.xlu1 %584  ;;  %v51_v28 = vld [vmem:[%s2096_s2 + $0x18] sm:$0xff] }
 0x31f   :  { %v520_v34 = vmul.f32 1.442695, %v510_v29  ;;  %v1964_v36 = vadd.f32 %v1117_v8, %v489_v33 }
 0x320   :  { %1740 = vpow2.f32 %v522_v31  ;;  %v513_v35 = vmul.f32 0.5, %v1961_v32 }
 0x321   :  { %v1404_v37 = vpop.f32.mrb[14].mxu0  ;;  %1742 = vpow2.f32 %v520_v34  ;;  %v512_v40 = vmul.f32 0.5, %v1964_v36  ;;  %v50_v34 = vld [vmem:[%s2096_s2 + $0x10] sm:$0xff] }
 0x322   :  { %v499_v38 = vpop.f32.mrb[15].mxu0  ;;  %v526_v39 = vmul.f32 1.442695, %v513_v35  ;;  %v1967_v41 = vadd.f32 %v1404_v37, %v1117_v8 }
 0x323   :  { %v524_v44 = vmul.f32 1.442695, %v512_v40  ;;  %v1972_v46 = vadd.f32 %v1117_v8, %v499_v38  ;;  %v1689_v8 = vpack.c.bf16 %v769_v7, %v768_v6  ;;  %v905_v6 = vld [vmem:[#allocation2 + $0x2e0] sm:$0xff] }
 0x324   :  { %1744 = vpow2.f32 %v526_v39  ;;  %v515_v45 = vmul.f32 0.5, %v1967_v41  ;;  %v53_v39 = vld [vmem:[%s2096_s2 + $0x28] sm:$0xff] }
 0x325   :  { %1746 = vpow2.f32 %v524_v44  ;;  %v514_v49 = vmul.f32 0.5, %v1972_v46 }
 0x326   :  { %v1737_v42 = vpop.eup %1736  ;;  %v530_v48 = vmul.f32 1.442695, %v515_v45  ;;  %v52_v45 = vld [vmem:[%s2096_s2 + $0x20] sm:$0xff] }
 0x327   :  { %v1739_v43 = vpop.eup %1738  ;;  %542 = vrot.lane.b32.xlu1 %v1737_v42, %s1805_s10  ;;  %v528_v51 = vmul.f32 1.442695, %v514_v49 }
 0x328   :  { %540 = vrot.lane.b32.xlu0 %v1739_v43, %s1805_s10  ;;  %1748 = vpow2.f32 %v530_v48 }
 0x329   :  { %1750 = vpow2.f32 %v528_v51 }
 0x32a   :  { %v1741_v47 = vpop.eup %1740 }
 0x32b   :  { %586 = vrot.lane.b32.xlu1 %v1869_v4, %s1804_s0  ;;  %v1743_v50 = vpop.eup %1742 }
 0x32c   :  { %546 = vrot.lane.b32.xlu0 %v1741_v47, %s1805_s10 }
 0x32e   :  { %v1745_v52 = vpop.eup %1744 }
 0x32f   :  { %588 = vrot.lane.b32.xlu1 %v1878_v12, %s1804_s0  ;;  %v1747_v4 = vpop.eup %1746 }
 0x330   :  { %544 = vrot.lane.b32.xlu0 %v1743_v50, %s1805_s10  ;;  %v55_v50 = vld [vmem:[%s2096_s2 + $0x38] sm:$0xff] }
 0x332   :  { %v1749_v53 = vpop.eup %1748 }
 0x333   :  { %590 = vrot.lane.b32.xlu1 %v1883_v13, %s1804_s0  ;;  %v1751_v12 = vpop.eup %1750  ;;  %v756_v13 = vld [vmem:[#allocation2 + $0x220] sm:$0xff] }
 0x334   :  { %550 = vrot.lane.b32.xlu0 %v1745_v52, %s1805_s10 }
 0x337   :  { %594 = vrot.lane.b32.xlu1 %v1897_v19, %s1804_s0  ;;  %v757_v19 = vld [vmem:[#allocation2 + $0x228] sm:$0xff] }
 0x338   :  { %548 = vrot.lane.b32.xlu0 %v1747_v4, %s1805_s10  ;;  %v1665_v55 = vpack.c.bf16 %v757_v19, %v756_v13  ;;  %v54_v13 = vld [vmem:[%s2096_s2 + $0x30] sm:$0xff]  ;;  %s1806_s2 = smov [#allocation5]  }
 0x339   :  { %s1095_s27 = sshll.u32 %s1806_s2, 4  ;;  %s1096_s27 = int_to_ptr.vmem [resolvable:$true] %s1095_s27 }
 0x33a   :  { %1666 = vmatprep.subr.bf16.mxu0 %v1665_v55  ;;  %s1774_s28 = scalar_lea.vmem %s1096_s27, 1024  ;;  %p1779_p9 = scmp.lt.s32.totalorder %s1096_s27, %s1096_s27 }
 0x33b   :  { %1034 = vrot.lane.b32.xlu1 %v1949_v10, %s1803_s7  ;;  %1668 = vmatpush3.bf16.msra.mxu0 %v1665_v55  ;;  %p1775_p8 = scmp.ne.s32.totalorder %s1096_s27, %s1774_s28  ;;  %p1780_p10 = scmp.lt.s32.totalorder %s1774_s28, %s1774_s28 }
 0x33c   :  { %554 = vrot.lane.b32.xlu0 %v1749_v53, %s1805_s10  ;;  %1670 = vmatprep.subr.bf16.mxu0 %v1669_v57 }
 0x33d   :  { %p1781_p11 = por %p1780_p10, %p1779_p9 }
 0x33f   :  { %1038 = vrot.lane.b32.xlu1 %v1955_v21, %s1803_s7  ;;  %1672 = vmatpush3.bf16.msra.mxu0 %v1669_v57  ;;  %p1782_p12 = pnand %p1781_p11, %p1775_p8 }
 0x340   :  { %552 = vrot.lane.b32.xlu0 %v1751_v12, %s1805_s10  ;;  %1674 = vmatprep.subr.bf16.mxu0 %v1673_v0 }
 0x343   :  { %1042 = vrot.lane.b32.xlu1 %v1961_v32, %s1803_s7  ;;  %1676 = vmatpush3.bf16.msra.mxu0 %v1673_v0  ;;  %v771_v0 = vld [vmem:[#allocation2 + $0x298] sm:$0xff] }
 0x344   :  { %592 = vrot.lane.b32.xlu0 %v1892_v18, %s1804_s0  ;;  %v762_v18 = vld [vmem:[#allocation2 + $0x250] sm:$0xff] }
 0x345   :  { %v1677_v60 = vpack.c.bf16 %v763_v3, %v762_v18  ;;  %v1693_v18 = vpack.c.bf16 %v771_v0, %v770_v59  ;;  %v898_v3 = vld [vmem:[#allocation2 + $0x2a8] sm:$0xff] }
 0x347   :  { %1046 = vrot.lane.b32.xlu1 %v1967_v41, %s1803_s7  ;;  %1678 = vmatprep.subr.bf16.mxu0 %v1677_v60 }
 0x348   :  { %1032 = vrot.lane.b32.xlu0 %v1951_v14, %s1803_s7  ;;  %1680 = vmatpush3.bf16.msra.mxu0 %v1677_v60  ;;  %v899_v60 = vld [vmem:[#allocation2 + $0x2b0] sm:$0xff] }
 0x349   :  { %1682 = vmatprep.subr.bf16.mxu0 %v1681_v62  ;;  %v1697_v61 = vpack.c.bf16 %v899_v60, %v898_v3 }
 0x34b   :  { %1698 = vmatprep.subr.bf16.mxu1 %v1697_v61 }
 0x34c   :  { %1036 = vrot.lane.b32.xlu0 %v1957_v26, %s1803_s7  ;;  %1684 = vmatpush3.bf16.msra.mxu0 %v1681_v62  ;;  %v902_v62 = vld [vmem:[#allocation2 + $0x2c8] sm:$0xff] }
 0x34d   :  { %1686 = vmatprep.subr.bf16.mxu0 %v1685_v5  ;;  %v1705_v2 = vpack.c.bf16 %v903_v63, %v902_v62 }
 0x350   :  { %1040 = vrot.lane.b32.xlu0 %v1964_v36, %s1803_s7  ;;  %1688 = vmatpush3.bf16.msra.mxu0 %v1685_v5  ;;  %v904_v5 = vld [vmem:[#allocation2 + $0x2d8] sm:$0xff] }
 0x351   :  { %1690 = vmatprep.subr.bf16.mxu0 %v1689_v8  ;;  %v1709_v7 = vpack.c.bf16 %v905_v6, %v904_v5 }
 0x354   :  { %1044 = vrot.lane.b32.xlu0 %v1972_v46, %s1803_s7  ;;  %1692 = vmatpush3.bf16.msra.mxu0 %v1689_v8  ;;  %v906_v8 = vld [vmem:[#allocation2 + $0x2e8] sm:$0xff] }
 0x355   :  { %1694 = vmatprep.subr.bf16.mxu0 %v1693_v18 }
 0x358   :  { %1696 = vmatpush3.bf16.msra.mxu0 %v1693_v18 }
 0x399   :  { %v543_v20 = vpop.permute.xlu1 %542 }
 0x39a   :  { %v565_v22 = vmul.f32 %v543_v20, %v49_v16  ;;  %v541_v23 = vpop.permute.xlu0 %540  ;;  %v909_v16 = vld [vmem:[#allocation2 + $0x300] sm:$0xff]  ;;  %v1118_v20 = vld [vmem:[#allocation2 + $0x218] ss:$0 sm:$0xff] }
 0x39b   :  { %v564_v24 = vmul.f32 %v541_v23, %v48_v17 }
 0x39c   :  { %v573_v25 = vadd.f32 %v565_v22, %v1949_v10 }
 0x39d   :  { %v572_v27 = vadd.f32 %v564_v24, %v1951_v14  ;;  %v587_v14 = vpop.permute.xlu1 %586 }
 0x39e   :  { %v547_v29 = vpop.permute.xlu0 %546  ;;  %v606_v31 = vsel %vm604_vm2, %v573_v25, %v583_v11 }
 0x39f   :  { %v605_v30 = vsel %vm604_vm2, %v572_v27, %v581_v9  ;;  %v567_v33 = vmul.f32 %v547_v29, %v51_v28  ;;  %v907_v9 = vld [vmem:[#allocation2 + $0x2f0] sm:$0xff] }
 0x3a0   :  { %1437 = vmatprep.mubr.msk.f32.mxu1 %vm613_vm3, %v605_v30  ;;  %v1713_v11 = vpack.c.bf16 %v907_v9, %v906_v8 }
 0x3a1   :  { %1438 = vmatmul.mubr.msk.f32.vlgmr.msra.gmra.mrb[8].mxu1 %vm613_vm3, %v606_v31  ;;  %v575_v37 = vadd.f32 %v567_v33, %v1955_v21  ;;  %v589_v47 = vpop.permute.xlu1 %588 }
 0x3a2   :  { %v545_v10 = vpop.permute.xlu0 %544  ;;  %1700 = vmatpush3.bf16.msra.mxu1 %v1697_v61 }
 0x3a3   :  { %v566_v35 = vmul.f32 %v545_v10, %v50_v34  ;;  %v608_v44 = vsel %vm604_vm2, %v575_v37, %v587_v14 }
 0x3a5   :  { %v574_v38 = vadd.f32 %v566_v35, %v1957_v26  ;;  %v591_v52 = vpop.permute.xlu1 %590 }
 0x3a6   :  { %v551_v40 = vpop.permute.xlu0 %550 }
 0x3a7   :  { %v607_v42 = vsel %vm604_vm2, %v574_v38, %v585_v15  ;;  %v569_v43 = vmul.f32 %v551_v40, %v53_v39  ;;  %v908_v15 = vld [vmem:[#allocation2 + $0x2f8] sm:$0xff] }
 0x3a8   :  { %1440 = vmatprep.mubr.msk.f32.mxu1 %vm613_vm3, %v607_v42  ;;  %v1717_v17 = vpack.c.bf16 %v909_v16, %v908_v15 }
 0x3a9   :  { %1441 = vmatmul.mubr.msk.f32.gmra.mrb[10].mxu1 %vm613_vm3, %v608_v44  ;;  %v577_v48 = vadd.f32 %v569_v43, %v1961_v32  ;;  %v595_v56 = vpop.permute.xlu1 %594 }
 0x3aa   :  { %v549_v21 = vpop.permute.xlu0 %548 }
 0x3ab   :  { %v568_v26 = vmul.f32 %v549_v21, %v52_v45  ;;  %v610_v12 = vsel %vm604_vm2, %v577_v48, %v591_v52  ;;  %v911_v48 = vld [vmem:[#allocation2 + $0x310] sm:$0xff] }
 0x3ad   :  { %v576_v49 = vadd.f32 %v568_v26, %v1964_v36  ;;  %v910_v26 = vld [vmem:[#allocation2 + $0x308] sm:$0xff] }
 0x3ae   :  { %v555_v51 = vpop.permute.xlu0 %554 }
 0x3af   :  { %v609_v4 = vsel %vm604_vm2, %v576_v49, %v589_v47  ;;  %v571_v53 = vmul.f32 %v555_v51, %v55_v50  ;;  %v1721_v49 = vpack.c.bf16 %v911_v48, %v910_v26  ;;  %v912_v50 = vld [vmem:[#allocation2 + $0x318] sm:$0xff]  ;;  %v913_v51 = vld [vmem:[#allocation2 + $0x320] sm:$0xff] }
 0x3b0   :  { %1443 = vmatprep.mubr.msk.f32.mxu1 %vm613_vm3, %v609_v4  ;;  %v1725_v52 = vpack.c.bf16 %v913_v51, %v912_v50  ;;  %v1127_v4 = vld [vmem:[#allocation2 + $0x2a0] ss:$0 sm:$0xff] }
 0x3b1   :  { %1444 = vmatmul.mubr.msk.f32.gmra.mrb[12].mxu1 %vm613_vm3, %v610_v12  ;;  %v579_v19 = vadd.f32 %v571_v53, %v1967_v41  ;;  %v900_v41 = vld [vmem:[#allocation2 + $0x2b8] sm:$0xff] }
 0x3b2   :  { %v553_v32 = vpop.permute.xlu0 %552 }
 0x3b3   :  { %v570_v36 = vmul.f32 %v553_v32, %v54_v13  ;;  %v612_v58 = vsel %vm604_vm2, %v579_v19, %v595_v56 }
 0x3b5   :  { %v578_v54 = vadd.f32 %v570_v36, %v1972_v46  ;;  %v901_v46 = vld [vmem:[#allocation2 + $0x2c0] sm:$0xff] }
 0x3b6   :  { %v593_v55 = vpop.permute.xlu0 %592  ;;  %v1701_v1 = vpack.c.bf16 %v901_v46, %v900_v41 }
 0x3b7   :  { %v611_v57 = vsel %vm604_vm2, %v578_v54, %v593_v55 }
 0x3b8   :  { %1446 = vmatprep.mubr.msk.f32.mxu1 %vm613_vm3, %v611_v57  ;;  %1702 = vmatprep.subr.bf16.mxu1 %v1701_v1 }
 0x3b9   :  { %1447 = vmatmul.mubr.msk.f32.gmra.mrb[14].mxu1 %vm613_vm3, %v612_v58 }
 0x3ba   :  { %1704 = vmatpush3.bf16.msra.mxu1 %v1701_v1 }
 0x3bb   :  { %1706 = vmatprep.subr.bf16.mxu1 %v1705_v2 }
 0x3be   :  { %1708 = vmatpush3.bf16.msra.mxu1 %v1705_v2 }
 0x3bf   :  { %1710 = vmatprep.subr.bf16.mxu1 %v1709_v7 }
 0x3c2   :  { %1712 = vmatpush3.bf16.msra.mxu1 %v1709_v7 }
 0x3c3   :  { %1714 = vmatprep.subr.bf16.mxu1 %v1713_v11 }
 0x3c6   :  { %1716 = vmatpush3.bf16.msra.mxu1 %v1713_v11 }
 0x3c7   :  { %1718 = vmatprep.subr.bf16.mxu1 %v1717_v17 }
 0x3ca   :  { %1720 = vmatpush3.bf16.msra.mxu1 %v1717_v17 }
 0x3cb   :  { %1722 = vmatprep.subr.bf16.mxu1 %v1721_v49 }
 0x3ce   :  { %1724 = vmatpush3.bf16.msra.mxu1 %v1721_v49 }
 0x3cf   :  { %1726 = vmatprep.subr.bf16.mxu1 %v1725_v52 }
 0x3d2   :  { %1728 = vmatpush3.bf16.msra.mxu1 %v1725_v52 }
 0x474   :  { %v1439_v22 = vpop.f32.mrb[8].mxu1 }
 0x475   :  { %v715_v23 = vadd.f32 %v1439_v22, %v1118_v20  ;;  %v709_v24 = vpop.f32.mrb[9].mxu1 }
 0x476   :  { %v710_v25 = vadd.f32 %v1118_v20, %v709_v24 }
 0x477   :  { %v749_v28 = vmax.f32 %v715_v23, 0.0 }
 0x478   :  { %v748_v27 = vmax.f32 %v710_v25, 0.0  ;;  %v1035_v25 = vpop.permute.xlu1 %1034 }
 0x47a   :  { %1481 = vmatprep.mubr.f32.mxu0 %v748_v27 }
 0x47b   :  { %1482 = vmatmul.mubr.f32.vlgmr.msra.gmra.mrb[16].mxu0 %v749_v28 }
 0x47c   :  { %v1442_v29 = vpop.f32.mrb[10].mxu1 }
 0x47d   :  { %v725_v30 = vadd.f32 %v1442_v29, %v1118_v20  ;;  %v719_v31 = vpop.f32.mrb[11].mxu1 }
 0x47e   :  { %v720_v33 = vadd.f32 %v1118_v20, %v719_v31 }
 0x47f   :  { %v751_v10 = vmax.f32 %v725_v30, 0.0 }
 0x480   :  { %v750_v34 = vmax.f32 %v720_v33, 0.0 }
 0x482   :  { %1484 = vmatprep.mubr.f32.mxu0 %v750_v34 }
 0x483   :  { %1485 = vmatmul.mubr.f32.gmra.mrb[18].mxu0 %v751_v10 }
 0x484   :  { %v1445_v14 = vpop.f32.mrb[12].mxu1 }
 0x485   :  { %v735_v35 = vadd.f32 %v1445_v14, %v1118_v20  ;;  %v729_v37 = vpop.f32.mrb[13].mxu1 }
 0x486   :  { %v730_v38 = vadd.f32 %v1118_v20, %v729_v37 }
 0x487   :  { %v753_v40 = vmax.f32 %v735_v35, 0.0 }
 0x488   :  { %v752_v39 = vmax.f32 %v730_v38, 0.0  ;;  %v1039_v38 = vpop.permute.xlu1 %1038 }
 0x48a   :  { %1487 = vmatprep.mubr.f32.mxu0 %v752_v39 }
 0x48b   :  { %1488 = vmatmul.mubr.f32.gmra.mrb[20].mxu0 %v753_v40 }
 0x48c   :  { %v1448_v42 = vpop.f32.mrb[14].mxu1  ;;  %v1043_v50 = vpop.permute.xlu1 %1042 }
 0x48d   :  { %v745_v43 = vadd.f32 %v1448_v42, %v1118_v20  ;;  %v739_v44 = vpop.f32.mrb[15].mxu1 }
 0x48e   :  { %v740_v45 = vadd.f32 %v1118_v20, %v739_v44  ;;  %v1128_v20 = vld [vmem:[#allocation2 + $0x328] ss:$0 sm:$0xff] }
 0x48f   :  { %v755_v21 = vmax.f32 %v745_v43, 0.0 }
 0x490   :  { %v754_v47 = vmax.f32 %v740_v45, 0.0 }
 0x492   :  { %1490 = vmatprep.mubr.f32.mxu0 %v754_v47 }
 0x493   :  { %1491 = vmatmul.mubr.f32.gmra.mrb[22].mxu0 %v755_v21 }
 0x54e   :  { %v1483_v53 = vpop.f32.mrb[16].mxu0 }
 0x54f   :  { %v849_v12 = vadd.f32 %v1483_v53, %v1127_v4  ;;  %v843_v13 = vpop.f32.mrb[17].mxu0 }
 0x550   :  { %v844_v32 = vadd.f32 %v1127_v4, %v843_v13 }
 0x551   :  { %v883_v36 = vadd.f32 %v849_v12, %v749_v28  ;;  %v1033_v28 = vpop.permute.xlu0 %1032 }
 0x552   :  { %v882_v19 = vadd.f32 %v844_v32, %v748_v27 }
 0x553   :  { %v891_v55 = vmax.f32 %v883_v36, 0.0 }
 0x554   :  { %v890_v54 = vmax.f32 %v882_v19, 0.0 }
 0x556   :  { %v1486_v56 = vpop.f32.mrb[18].mxu0  ;;  %1525 = vmatprep.mubr.f32.mxu1 %v890_v54 }
 0x557   :  { %v859_v57 = vadd.f32 %v1486_v56, %v1127_v4  ;;  %v853_v58 = vpop.f32.mrb[19].mxu0  ;;  %1526 = vmatmul.mubr.f32.vlgmr.msra.gmra.mrb[16].mxu1 %v891_v55  ;;  %v1047_v56 = vpop.permute.xlu1 %1046 }
 0x558   :  { %v854_v59 = vadd.f32 %v1127_v4, %v853_v58 }
 0x559   :  { %v885_v0 = vadd.f32 %v859_v57, %v751_v10 }
 0x55a   :  { %v884_v18 = vadd.f32 %v854_v59, %v750_v34 }
 0x55b   :  { %v893_v60 = vmax.f32 %v885_v0, 0.0 }
 0x55c   :  { %v892_v3 = vmax.f32 %v884_v18, 0.0 }
 0x55e   :  { %v1489_v41 = vpop.f32.mrb[20].mxu0  ;;  %1528 = vmatprep.mubr.f32.mxu1 %v892_v3 }
 0x55f   :  { %v869_v61 = vadd.f32 %v1489_v41, %v1127_v4  ;;  %v863_v46 = vpop.f32.mrb[21].mxu0  ;;  %1529 = vmatmul.mubr.f32.gmra.mrb[18].mxu1 %v893_v60 }
 0x560   :  { %v864_v1 = vadd.f32 %v1127_v4, %v863_v46 }
 0x561   :  { %v887_v62 = vadd.f32 %v869_v61, %v753_v40  ;;  %v1037_v40 = vpop.permute.xlu0 %1036 }
 0x562   :  { %v886_v63 = vadd.f32 %v864_v1, %v752_v39 }
 0x563   :  { %v895_v5 = vmax.f32 %v887_v62, 0.0 }
 0x564   :  { %v894_v2 = vmax.f32 %v886_v63, 0.0 }
 0x565   :  { %v1041_v52 = vpop.permute.xlu0 %1040 }
 0x566   :  { %v1492_v6 = vpop.f32.mrb[22].mxu0  ;;  %1531 = vmatprep.mubr.f32.mxu1 %v894_v2 }
 0x567   :  { %v879_v7 = vadd.f32 %v1492_v6, %v1127_v4  ;;  %v873_v8 = vpop.f32.mrb[23].mxu0  ;;  %1532 = vmatmul.mubr.f32.gmra.mrb[20].mxu1 %v895_v5 }
 0x568   :  { %v874_v9 = vadd.f32 %v1127_v4, %v873_v8 }
 0x569   :  { %v889_v11 = vadd.f32 %v879_v7, %v755_v21  ;;  %v1045_v58 = vpop.permute.xlu0 %1044 }
 0x56a   :  { %v888_v15 = vadd.f32 %v874_v9, %v754_v47 }
 0x56b   :  { %v897_v17 = vmax.f32 %v889_v11, 0.0 }
 0x56c   :  { %v896_v16 = vmax.f32 %v888_v15, 0.0 }
 0x56e   :  { %1534 = vmatprep.mubr.f32.mxu1 %v896_v16 }
 0x56f   :  { %1535 = vmatmul.mubr.f32.gmra.mrb[22].mxu1 %v897_v17 }
 0x62a   :  { %v1527_v22 = vpop.f32.mrb[16].mxu1 }
 0x62b   :  { %v991_v23 = vadd.f32 %v1527_v22, %v1128_v20  ;;  %v985_v24 = vpop.f32.mrb[17].mxu1 }
 0x62c   :  { %v986_v27 = vadd.f32 %v1128_v20, %v985_v24 }
 0x62d   :  { %v1057_v29 = vsel %vm88_vm0, %v991_v23, %v1035_v25 }
 0x62e   :  { %v1066_v30 = vsel %vm1064_vm4, %v1057_v29, %v1035_v25  ;;  %v1056_v31 = vsel %vm88_vm0, %v986_v27, %v1033_v28 }
 0x62f   :  { %v1075_v33 = vsel %vm1073_vm5, %v1066_v30, 0.0  ;;  %v1065_v34 = vsel %vm1064_vm4, %v1056_v31, %v1033_v28 }
 0x630   :  { %1083 = vst [vmem:[#allocation5 + $0x8] sm:$0xff] %v1075_v33  ;;  %v1074_v10 = vsel %vm1073_vm5, %v1065_v34, 0.0 }
 0x631   :  { %1082 = vst [vmem:[#allocation5] sm:$0xff] %v1074_v10 }
 0x632   :  { %v1530_v14 = vpop.f32.mrb[18].mxu1 }
 0x633   :  { %v1001_v35 = vadd.f32 %v1530_v14, %v1128_v20  ;;  %v995_v37 = vpop.f32.mrb[19].mxu1 }
 0x634   :  { %v996_v39 = vadd.f32 %v1128_v20, %v995_v37 }
 0x635   :  { %v1059_v42 = vsel %vm88_vm0, %v1001_v35, %v1039_v38 }
 0x636   :  { %v1068_v43 = vsel %vm1064_vm4, %v1059_v42, %v1039_v38  ;;  %v1058_v44 = vsel %vm88_vm0, %v996_v39, %v1037_v40 }
 0x637   :  { %v1077_v45 = vsel %vm1073_vm5, %v1068_v43, 0.0  ;;  %v1067_v47 = vsel %vm1064_vm4, %v1058_v44, %v1037_v40 }
 0x638   :  { %1085 = vst [vmem:[#allocation5 + $0x18] sm:$0xff] %v1077_v45  ;;  %v1076_v21 = vsel %vm1073_vm5, %v1067_v47, 0.0 }
 0x639   :  { %1084 = vst [vmem:[#allocation5 + $0x10] sm:$0xff] %v1076_v21 }
 0x63a   :  { %v1533_v26 = vpop.f32.mrb[20].mxu1 }
 0x63b   :  { %v1011_v48 = vadd.f32 %v1533_v26, %v1128_v20  ;;  %v1005_v49 = vpop.f32.mrb[21].mxu1 }
 0x63c   :  { %v1006_v51 = vadd.f32 %v1128_v20, %v1005_v49 }
 0x63d   :  { %v1061_v4 = vsel %vm88_vm0, %v1011_v48, %v1043_v50 }
 0x63e   :  { %v1070_v53 = vsel %vm1064_vm4, %v1061_v4, %v1043_v50  ;;  %v1060_v12 = vsel %vm88_vm0, %v1006_v51, %v1041_v52 }
 0x63f   :  { %v1079_v13 = vsel %vm1073_vm5, %v1070_v53, 0.0  ;;  %v1069_v32 = vsel %vm1064_vm4, %v1060_v12, %v1041_v52 }
 0x640   :  { %1087 = vst [vmem:[#allocation5 + $0x28] sm:$0xff] %v1079_v13  ;;  %v1078_v36 = vsel %vm1073_vm5, %v1069_v32, 0.0 }
 0x641   :  { %1086 = vst [vmem:[#allocation5 + $0x20] sm:$0xff] %v1078_v36 }
 0x642   :  { %v1536_v19 = vpop.f32.mrb[22].mxu1 }
 0x643   :  { %v1021_v54 = vadd.f32 %v1536_v19, %v1128_v20  ;;  %v1015_v55 = vpop.f32.mrb[23].mxu1 }
 0x644   :  { %v1016_v57 = vadd.f32 %v1128_v20, %v1015_v55 }
 0x645   :  { %v1063_v59 = vsel %vm88_vm0, %v1021_v54, %v1047_v56 }
 0x646   :  { %v1072_v0 = vsel %vm1064_vm4, %v1063_v59, %v1047_v56  ;;  %v1062_v18 = vsel %vm88_vm0, %v1016_v57, %v1045_v58 }
 0x647   :  { %v1081_v3 = vsel %vm1073_vm5, %v1072_v0, 0.0  ;;  %v1071_v60 = vsel %vm1064_vm4, %v1062_v18, %v1045_v58 }
 0x648   :  { %1089 = vst [vmem:[#allocation5 + $0x38] sm:$0xff] %v1081_v3  ;;  %v1080_v41 = vsel %vm1073_vm5, %v1071_v60, 0.0 }
 0x649   :  { %1088 = vst [vmem:[#allocation5 + $0x30] sm:$0xff] %v1080_v41 }
 0x64a   :  { %1785 = shalt.err (!%p1782_p12)
}
 0x64b   :  { %s1786_s5 = scalar_lea.hbm %s2098_s4, 1024 }
 0x64c   :  { %p1787_p13 = scmp.ne.s32.totalorder %s2098_s4, %s1786_s5  ;;  %p1790_p0 = scmp.lt.u32.totalorder %s1786_s5, %s2098_s4 }
 0x64e   :  { %p1792_p1 = pnand %p1790_p0, %p1787_p13 }
 0x650   :  { %1795 = shalt.err (!%p1792_p1)
}
 0x651   :  { %1101 = dma.vmem_to_hbm [thread:$0]  %s1096_s27, 1024, %s2098_s4, [#allocation4], %s1801_s25, %s1801_s25, %s1802_s26  }
 0x652   :  { %1798 = dma.done.wait [#allocation4], 1024  }
 0x653   :  { %1799 = vsyncadd [#allocation4], 4294966272 }
 0x654   :  { %1105 = vsyncpa [#allocation3], 1 }
 0x655   :  { %1106 = vsyncpa [#allocation4], 1 }

</bundles_post_ra>
